<compile_context>
chip_gen: v6e
topology: v6e:2x2x1
jax: 0.10.0
libtpu: 0.0.40
codegen_flags: <defaults>
</compile_context>

<pallas_src>
import functools

import jax
import jax.numpy as jnp
from jax.experimental import pallas as pl
from jax.experimental.pallas import tpu as pltpu


IN_DIM = 16 * 5 * 5            # 400
H1, H2, OUT = 120, 84, 10      # logical widths
H1P, H2P = 128, 128            # lane-padded hidden widths (full vregs / MXU tiles)
W3P = 128                      # fc3 weight lane-padded; result sliced to OUT in-kernel


def _round_up(n, m):
    return ((n + m - 1) // m) * m


def _pad2d(a, shape):
    return jnp.pad(a, ((0, shape[0] - a.shape[0]), (0, shape[1] - a.shape[1])))


def _sigmoid(x):
    # exp on the EUP; divide replaced by approx reciprocal (also EUP slot),
    # keeping the VALU free. Error ~1e-3 relative, well inside tolerance.
    return pl.reciprocal(1.0 + jnp.exp(-x), approx=True)


def mlp_kernel(x_ref, w1_ref, b1_ref, w2_ref, b2_ref, w3_ref, b3_ref, o_ref):
    """One batch tile: sigmoid(x@W1+b1) -> sigmoid(.@W2+b2) -> .@W3+b3."""
    # bf16 cast happens here (x lives in HBM as f32; no wrapper cast pass).
    x = x_ref[...].astype(jnp.bfloat16)                                 # (TM, 400)
    h1 = jnp.dot(x, w1_ref[...], preferred_element_type=jnp.float32) + b1_ref[...]
    h1 = _sigmoid(h1)                                                   # (TM, 128) f32
    h2 = jnp.dot(h1.astype(jnp.bfloat16), w2_ref[...],
                 preferred_element_type=jnp.float32) + b2_ref[...]
    h2 = _sigmoid(h2)                                                   # (TM, 128) f32
    out = jnp.dot(h2.astype(jnp.bfloat16), w3_ref[...],
                  preferred_element_type=jnp.float32) + b3_ref[...]     # (TM, 128) f32
    # Narrow store: only the 10 real logit columns go back to HBM.
    o_ref[...] = out[:, :OUT]                                           # (TM, 10) f32


@functools.partial(jax.jit, static_argnames=("block_rows",))
def classifier_forward(x, params, *, block_rows=2048):
    """x: (B, 16, 5, 5) float32 NCHW. Returns (B, 10) float32."""
    w1, b1, w2, b2, w3, b3 = params
    B = x.shape[0]

    # Pure metadata reshape (row-major contiguous), identical to torch .view;
    # no dtype cast, no pad copy of x in HBM.
    x_flat = x.reshape(B, IN_DIM)

    # Lane-pad weights to 128 (zeros), bf16 for the MXU; biases stay f32 and are
    # added to the f32 accumulator. ~170 KiB total -> VMEM-resident.
    w1p = _pad2d(w1, (IN_DIM, H1P)).astype(jnp.bfloat16)
    b1p = _pad2d(b1, (1, H1P)).astype(jnp.float32)
    w2p = _pad2d(w2, (H1P, H2P)).astype(jnp.bfloat16)
    b2p = _pad2d(b2, (1, H2P)).astype(jnp.float32)
    w3p = _pad2d(w3, (H2P, W3P)).astype(jnp.bfloat16)
    b3p = _pad2d(b3, (1, W3P)).astype(jnp.float32)

    # Batch tile: multiple of 8 sublanes, at most block_rows, and capped so the
    # grid has >= 2 steps when possible (both v7x TensorCores get work). The
    # ragged last block (B % tm != 0) is handled by Pallas: OOB reads are
    # unspecified but only feed rows whose output writes are masked.
    b8 = _round_up(max(B, 1), 8)
    tm = max(8, min(block_rows, _round_up(pl.cdiv(b8, 2), 8)))
    grid = (pl.cdiv(B, tm),)

    in_specs = [
        pl.BlockSpec((tm, IN_DIM), lambda i: (i, 0)),    # x tile: pipelined (f32)
        pl.BlockSpec((IN_DIM, H1P), lambda i: (0, 0)),   # weights/biases: resident
        pl.BlockSpec((1, H1P), lambda i: (0, 0)),
        pl.BlockSpec((H1P, H2P), lambda i: (0, 0)),
        pl.BlockSpec((1, H2P), lambda i: (0, 0)),
        pl.BlockSpec((H2P, W3P), lambda i: (0, 0)),
        pl.BlockSpec((1, W3P), lambda i: (0, 0)),
    ]
    # Block minor dim (10) == full array minor dim -> legal; HBM region per
    # block is contiguous (all columns of tm rows), so the writeback DMA is a
    # single dense 40 B/row stream.
    out_specs = pl.BlockSpec((tm, OUT), lambda i: (i, 0))

    weight_bytes = sum(int(a.size) * a.dtype.itemsize
                       for a in (w1p, b1p, w2p, b2p, w3p, b3p))
    cost = pl.CostEstimate(
        flops=2 * B * (IN_DIM * H1P + H1P * H2P + H2P * W3P),
        transcendentals=2 * B * (H1P + H2P),
        bytes_accessed=B * IN_DIM * 4 + weight_bytes + B * OUT * 4,
    )

    out = pl.pallas_call(
        mlp_kernel,
        out_shape=jax.ShapeDtypeStruct((B, OUT), jnp.float32),
        grid=grid,
        in_specs=in_specs,
        out_specs=out_specs,
        compiler_params=pltpu.CompilerParams(
            dimension_semantics=("parallel",),  # megacore split on v7x
        ),
        cost_estimate=cost,
    )(x_flat, w1p, b1p, w2p, b2p, w3p, b3p)

    return out


def init_params(key):
    """Deterministic init mimicking nn.Linear's U(-1/sqrt(fan_in), 1/sqrt(fan_in)).
    Weights stored as (in, out); biases as (1, out)."""
    dims = [(IN_DIM, H1), (H1, H2), (H2, OUT)]
    params = []
    for i, (fan_in, fan_out) in enumerate(dims):
        kw, kb = jax.random.split(jax.random.fold_in(key, i))
        bound = 1.0 / jnp.sqrt(jnp.float32(fan_in))
        w = jax.random.uniform(kw, (fan_in, fan_out), jnp.float32, -bound, bound)
        b = jax.random.uniform(kb, (1, fan_out), jnp.float32, -bound, bound)
        params += [w, b]
    return tuple(params)


def reference_forward(x, params):
    """Plain-JAX f32 reference mirroring the PyTorch module."""
    w1, b1, w2, b2, w3, b3 = params
    xf = x.reshape(x.shape[0], -1)
    h1 = jax.nn.sigmoid(xf @ w1 + b1)
    h2 = jax.nn.sigmoid(h1 @ w2 + b2)
    return h2 @ w3 + b3


if __name__ == "__main__":
    key = jax.random.PRNGKey(0)
    kx, kp = jax.random.split(key)

    B = 2
    x = jax.random.normal(kx, (B, 16, 5, 5), jnp.float32)  # NCHW, matches 16*5*5 view
    params = init_params(kp)

    out = classifier_forward(x, params)
    out = jax.block_until_ready(out)

    ref = reference_forward(x, params)
    assert out.shape == (B, OUT)
    # bf16 matmul inputs + approx-reciprocal sigmoid, f32 accumulation ->
    # loose-but-safe tolerance vs the f32 reference.
    assert jnp.allclose(out, ref, atol=2e-2, rtol=2e-2)

    print("KERNEL_OK")
</pallas_src>

<mosaic_0001>
module attributes {stable_mosaic.version = 11 : i64} {
  func.func @mlp_kernel(%arg0: i32, %arg1: memref<8x400xf32, #tpu.memory_space<vmem>>, %arg2: memref<400x128xbf16, #tpu.memory_space<vmem>>, %arg3: memref<1x128xf32, #tpu.memory_space<vmem>>, %arg4: memref<128x128xbf16, #tpu.memory_space<vmem>>, %arg5: memref<1x128xf32, #tpu.memory_space<vmem>>, %arg6: memref<128x128xbf16, #tpu.memory_space<vmem>>, %arg7: memref<1x128xf32, #tpu.memory_space<vmem>>, %arg8: memref<8x10xf32, #tpu.memory_space<vmem>>) attributes {dimension_semantics = [#tpu.dimension_semantics<parallel>], iteration_bounds = array<i64: 1>, scalar_prefetch = 0 : i64, scratch_operands = 0 : i64, tpu.core_type = #tpu.core_type<tc>, window_params = [{transform_indices = @transform_0, window_bounds = array<i64: 8, 400>}, {pipeline_mode = #tpu.pipeline_mode<synchronous>, transform_indices = @transform_1, window_bounds = array<i64: 400, 128>}, {pipeline_mode = #tpu.pipeline_mode<synchronous>, transform_indices = @transform_2, window_bounds = array<i64: 1, 128>}, {pipeline_mode = #tpu.pipeline_mode<synchronous>, transform_indices = @transform_3, window_bounds = array<i64: 128, 128>}, {pipeline_mode = #tpu.pipeline_mode<synchronous>, transform_indices = @transform_4, window_bounds = array<i64: 1, 128>}, {pipeline_mode = #tpu.pipeline_mode<synchronous>, transform_indices = @transform_5, window_bounds = array<i64: 128, 128>}, {pipeline_mode = #tpu.pipeline_mode<synchronous>, transform_indices = @transform_6, window_bounds = array<i64: 1, 128>}, {transform_indices = @transform_7, window_bounds = array<i64: 8, 10>}]} {
    %c0 = arith.constant 0 : index
    %c0_0 = arith.constant 0 : index
    %0 = vector.load %arg1[%c0, %c0_0] : memref<8x400xf32, #tpu.memory_space<vmem>>, vector<8x400xf32>
    %1 = arith.truncf %0 : vector<8x400xf32> to vector<8x400xbf16>
    %c0_1 = arith.constant 0 : index
    %c0_2 = arith.constant 0 : index
    %2 = vector.load %arg2[%c0_1, %c0_2] : memref<400x128xbf16, #tpu.memory_space<vmem>>, vector<400x128xbf16>
    %cst = arith.constant dense<0.000000e+00> : vector<8x128xf32>
    %3 = tpu.matmul %1, %2, %cst {dimension_numbers = #tpu.dot_dimension_numbers<[1], [0], [0], [1], [0, 0, 1, 1], [], []>} : vector<8x400xbf16>, vector<400x128xbf16>, vector<8x128xf32> -> vector<8x128xf32>
    %c0_3 = arith.constant 0 : index
    %c0_4 = arith.constant 0 : index
    %4 = vector.load %arg3[%c0_3, %c0_4] : memref<1x128xf32, #tpu.memory_space<vmem>>, vector<1x128xf32>
    %5 = vector.broadcast %4 : vector<1x128xf32> to vector<8x128xf32>
    %6 = arith.addf %3, %5 : vector<8x128xf32>
    %cst_5 = arith.constant 0.000000e+00 : f32
    %7 = vector.broadcast %cst_5 : f32 to vector<8x128xf32>
    %8 = arith.subf %7, %6 : vector<8x128xf32>
    %9 = math.exp %8 : vector<8x128xf32>
    %cst_6 = arith.constant 1.000000e+00 : f32
    %10 = vector.broadcast %cst_6 : f32 to vector<8x128xf32>
    %11 = arith.addf %10, %9 : vector<8x128xf32>
    %12 = tpu.reciprocal %11 {approx = true} : vector<8x128xf32> -> vector<8x128xf32>
    %13 = arith.truncf %12 : vector<8x128xf32> to vector<8x128xbf16>
    %c0_7 = arith.constant 0 : index
    %c0_8 = arith.constant 0 : index
    %14 = vector.load %arg4[%c0_7, %c0_8] : memref<128x128xbf16, #tpu.memory_space<vmem>>, vector<128x128xbf16>
    %cst_9 = arith.constant dense<0.000000e+00> : vector<8x128xf32>
    %15 = tpu.matmul %13, %14, %cst_9 {dimension_numbers = #tpu.dot_dimension_numbers<[1], [0], [0], [1], [0, 0, 1, 1], [], []>} : vector<8x128xbf16>, vector<128x128xbf16>, vector<8x128xf32> -> vector<8x128xf32>
    %c0_10 = arith.constant 0 : index
    %c0_11 = arith.constant 0 : index
    %16 = vector.load %arg5[%c0_10, %c0_11] : memref<1x128xf32, #tpu.memory_space<vmem>>, vector<1x128xf32>
    %17 = vector.broadcast %16 : vector<1x128xf32> to vector<8x128xf32>
    %18 = arith.addf %15, %17 : vector<8x128xf32>
    %cst_12 = arith.constant 0.000000e+00 : f32
    %19 = vector.broadcast %cst_12 : f32 to vector<8x128xf32>
    %20 = arith.subf %19, %18 : vector<8x128xf32>
    %21 = math.exp %20 : vector<8x128xf32>
    %cst_13 = arith.constant 1.000000e+00 : f32
    %22 = vector.broadcast %cst_13 : f32 to vector<8x128xf32>
    %23 = arith.addf %22, %21 : vector<8x128xf32>
    %24 = tpu.reciprocal %23 {approx = true} : vector<8x128xf32> -> vector<8x128xf32>
    %25 = arith.truncf %24 : vector<8x128xf32> to vector<8x128xbf16>
    %c0_14 = arith.constant 0 : index
    %c0_15 = arith.constant 0 : index
    %26 = vector.load %arg6[%c0_14, %c0_15] : memref<128x128xbf16, #tpu.memory_space<vmem>>, vector<128x128xbf16>
    %cst_16 = arith.constant dense<0.000000e+00> : vector<8x128xf32>
    %27 = tpu.matmul %25, %26, %cst_16 {dimension_numbers = #tpu.dot_dimension_numbers<[1], [0], [0], [1], [0, 0, 1, 1], [], []>} : vector<8x128xbf16>, vector<128x128xbf16>, vector<8x128xf32> -> vector<8x128xf32>
    %c0_17 = arith.constant 0 : index
    %c0_18 = arith.constant 0 : index
    %28 = vector.load %arg7[%c0_17, %c0_18] : memref<1x128xf32, #tpu.memory_space<vmem>>, vector<1x128xf32>
    %29 = vector.broadcast %28 : vector<1x128xf32> to vector<8x128xf32>
    %30 = arith.addf %27, %29 : vector<8x128xf32>
    %31 = vector.extract_strided_slice %30 {offsets = [0, 0], sizes = [8, 10], strides = [1, 1]} : vector<8x128xf32> to vector<8x10xf32>
    %c0_19 = arith.constant 0 : index
    %c0_20 = arith.constant 0 : index
    %32 = vector.load %arg8[%c0_19, %c0_20] : memref<8x10xf32, #tpu.memory_space<vmem>>, vector<8x10xf32>
    tpu.vector_store %arg8[%c0_19, %c0_20], %31 {strides = array<i32>} : memref<8x10xf32, #tpu.memory_space<vmem>>, vector<8x10xf32>,
    return
  }
  func.func @transform_0(%arg0: i32) -> (i32, i32) {
    %c0_i32 = arith.constant 0 : i32
    %c0_i32_0 = arith.constant 0 : i32
    return %arg0, %c0_i32 : i32, i32
  }
  func.func @transform_1(%arg0: i32) -> (i32, i32) {
    %c0_i32 = arith.constant 0 : i32
    %c0_i32_0 = arith.constant 0 : i32
    %c0_i32_1 = arith.constant 0 : i32
    return %c0_i32, %c0_i32_0 : i32, i32
  }
  func.func @transform_2(%arg0: i32) -> (i32, i32) {
    %c0_i32 = arith.constant 0 : i32
    %c0_i32_0 = arith.constant 0 : i32
    %c0_i32_1 = arith.constant 0 : i32
    return %c0_i32, %c0_i32_0 : i32, i32
  }
  func.func @transform_3(%arg0: i32) -> (i32, i32) {
    %c0_i32 = arith.constant 0 : i32
    %c0_i32_0 = arith.constant 0 : i32
    %c0_i32_1 = arith.constant 0 : i32
    return %c0_i32, %c0_i32_0 : i32, i32
  }
  func.func @transform_4(%arg0: i32) -> (i32, i32) {
    %c0_i32 = arith.constant 0 : i32
    %c0_i32_0 = arith.constant 0 : i32
    %c0_i32_1 = arith.constant 0 : i32
    return %c0_i32, %c0_i32_0 : i32, i32
  }
  func.func @transform_5(%arg0: i32) -> (i32, i32) {
    %c0_i32 = arith.constant 0 : i32
    %c0_i32_0 = arith.constant 0 : i32
    %c0_i32_1 = arith.constant 0 : i32
    return %c0_i32, %c0_i32_0 : i32, i32
  }
  func.func @transform_6(%arg0: i32) -> (i32, i32) {
    %c0_i32 = arith.constant 0 : i32
    %c0_i32_0 = arith.constant 0 : i32
    %c0_i32_1 = arith.constant 0 : i32
    return %c0_i32, %c0_i32_0 : i32, i32
  }
  func.func @transform_7(%arg0: i32) -> (i32, i32) {
    %c0_i32 = arith.constant 0 : i32
    %c0_i32_0 = arith.constant 0 : i32
    return %arg0, %c0_i32 : i32, i32
  }
}

</mosaic_0001>

<bundles_post_ra>
// kernel: classifier_forward.1
= control target key start
LH: loop header
LB: loop body
LE: loop exit
PB: predicated region body
PF: predicated region fallthrough
CT: control target
= control target key end

     0   :  { %12 = vsyncpa [#allocation3], 0  ;;  %v832_v1 = vmov 0   ;;  %v43_v19 = vlaneseq  ;;  %v833_v24 = vmov 1983009808   ;;  %vm287_vm0 = vcmask 130048   ;;  %s1054_s0 = inlined_call_operand.vmem [shape: f32[2,400], index: 0, kind: input, shape index: {}]   ;;  %s1055_s1 = inlined_call_operand.vmem [shape: bf16[400,128], index: 1, kind: input, shape index: {}]   ;;  %s1056_s2 = inlined_call_operand.vmem [shape: f32[1,128], index: 2, kind: input, shape index: {}]   ;;  %s1057_s3 = inlined_call_operand.vmem [shape: bf16[128,128], index: 3, kind: input, shape index: {}]   ;;  %s1058_s4 = inlined_call_operand.vmem [shape: f32[1,128], index: 4, kind: input, shape index: {}]   ;;  %s1059_s5 = inlined_call_operand.vmem [shape: bf16[128,128], index: 5, kind: input, shape index: {}]   ;;  %s1060_s6 = inlined_call_operand.vmem [shape: f32[1,128], index: 6, kind: input, shape index: {}]   ;;  %s1061_s7 = inlined_call_operand.hbm [shape: f32[2,10], index: 7, kind: output, shape index: {}]  }
   0x1   :  { %v755_v0 = vld [vmem:[%s1055_s1 + $0x78] sm:$0xff]   ;;  %331 = vmatprep.subr.bf16.mxu1 %v832_v1  ;;  %v758_v4 = vld [vmem:[%s1055_s1 + $0x70] sm:$0xff]   ;;  %v761_v7 = vld [vmem:[%s1055_s1 + $0x68] sm:$0xff]   ;;  %v41_v25 = vunpack.c.l.s4 %v833_v24  ;;  %v834_v49 = vmov 0.0   ;;  %vm835_vm1 = vmmov 0   ;;  %vm605_vm2 = vcmask 80896  }
   0x2   :  { %668 = vmatprep.subr.bf16.mxu0 %v755_v0  ;;  %v756_v2 = vld [vmem:[%s1055_s1 + $0xb8] sm:$0xff]   ;;  %v759_v5 = vld [vmem:[%s1055_s1 + $0xb0] sm:$0xff]   ;;  %v762_v8 = vld [vmem:[%s1055_s1 + $0xa8] sm:$0xff]   ;;  %v44_v26 = vshrl.u32 %v43_v19, 7 }
   0x3   :  { %v757_v3 = vld [vmem:[%s1055_s1 + $0x38] sm:$0xff]   ;;  %332 = vmatpush1.bf16.msra.mxu1 %v756_v2  ;;  %v760_v6 = vld [vmem:[%s1055_s1 + $0x30] sm:$0xff]   ;;  %v763_v9 = vld [vmem:[%s1055_s1 + $0x28] sm:$0xff]   ;;  %v42_v31 = vunpack.c.0.s8 %v41_v25 }
   0x4   :  { %669 = vmatpush3.bf16.msra.mxu0 %v757_v3  ;;  %333 = vmatprep.subr.bf16.mxu1 %v832_v1  ;;  %v764_v10 = vld [vmem:[%s1055_s1 + $0x60] sm:$0xff]   ;;  %v767_v13 = vld [vmem:[%s1055_s1 + $0x58] sm:$0xff]   ;;  %v770_v16 = vld [vmem:[%s1055_s1 + $0x50] sm:$0xff]  }
   0x5   :  { %670 = vmatprep.subr.bf16.mxu0 %v758_v4  ;;  %v765_v11 = vld [vmem:[%s1055_s1 + $0xa0] sm:$0xff]   ;;  %v768_v14 = vld [vmem:[%s1055_s1 + $0x98] sm:$0xff]   ;;  %v771_v17 = vld [vmem:[%s1055_s1 + $0x90] sm:$0xff]   ;;  %v45_v34 = vsub.s32 %v42_v31, %v44_v26 }
   0x6   :  { %v766_v12 = vld [vmem:[%s1055_s1 + $0x20] sm:$0xff]   ;;  %v769_v15 = vld [vmem:[%s1055_s1 + $0x18] sm:$0xff]   ;;  %v772_v18 = vld [vmem:[%s1055_s1 + $0x10] sm:$0xff]  }
   0x7   :  { %334 = vmatpush1.bf16.msra.mxu1 %v759_v5  ;;  %v773_v20 = vld [vmem:[%s1055_s1 + $0x48] sm:$0xff]   ;;  %v776_v23 = vld [vmem:[%s1055_s1 + $0x40] sm:$0xff]   ;;  %v781_v30 = vld [vmem:[%s1054_s0 + $0x10] ss:$8 sps:$4 sm:$0xff]  }
   0x8   :  { %671 = vmatpush3.bf16.msra.mxu0 %v760_v6  ;;  %335 = vmatprep.subr.bf16.mxu1 %v832_v1  ;;  %v774_v21 = vld [vmem:[%s1055_s1 + $0x88] sm:$0xff]   ;;  %v777_v27 = vld [vmem:[%s1055_s1 + $0x80] sm:$0xff]   ;;  %v785_v33 = vld [vmem:[%s1054_s0 + $0x14] ss:$8 sps:$4 sm:$0xff]   ;;  %v60_v37 = vrot.slane %v781_v30, %v45_v34 }
   0x9   :  { %672 = vmatprep.subr.bf16.mxu0 %v761_v7  ;;  %v775_v22 = vld [vmem:[%s1055_s1 + $0x8] sm:$0xff]   ;;  %v778_v29 = vld [vmem:[%s1055_s1] sm:$0xff]   ;;  %v67_v39 = vrot.slane %v785_v33, %v45_v34  ;;  %v786_v48 = vld [vmem:[%s1057_s3 + $0x38] sm:$0xff]  }
   0xa   :  { %v779_v28 = vld [vmem:[%s1054_s0] ss:$8 sps:$4 sm:$0xff]   ;;  %v784_v32 = vld [vmem:[%s1054_s0 + $0x4] ss:$8 sps:$4 sm:$0xff]   ;;  %v787_v50 = vld [vmem:[%s1057_s3 + $0x30] sm:$0xff]  }
   0xb   :  { %336 = vmatpush1.bf16.msra.mxu1 %v762_v8  ;;  %v783_v35 = vld [vmem:[%s1055_s1 + $0xc0] sm:$0xff]   ;;  %v46_v36 = vrot.slane %v779_v28, %v45_v34  ;;  %v53_v38 = vrot.slane %v784_v32, %v45_v34  ;;  %v788_v51 = vld [vmem:[%s1057_s3 + $0x28] sm:$0xff]   ;;  %v790_v53 = vld [vmem:[%s1057_s3 + $0x18] sm:$0xff]  }
   0xc   :  { %673 = vmatpush3.bf16.msra.mxu0 %v763_v9  ;;  %337 = vmatprep.subr.bf16.mxu1 %v832_v1  ;;  %v789_v52 = vld [vmem:[%s1057_s3 + $0x20] sm:$0xff]   ;;  %v791_v54 = vld [vmem:[%s1057_s3 + $0x10] sm:$0xff]   ;;  %v792_v55 = vld [vmem:[%s1057_s3 + $0x8] sm:$0xff]  }
   0xd   :  { %674 = vmatprep.subr.bf16.mxu0 %v764_v10  ;;  %v69_v40 = vcombine.high %v46_v36, %v60_v37  ;;  %v68_v41 = vcombine.low %v46_v36, %v60_v37  ;;  %v71_v42 = vcombine.high %v53_v38, %v67_v39  ;;  %v70_v43 = vcombine.low %v53_v38, %v67_v39  ;;  %v793_v56 = vld [vmem:[%s1057_s3] sm:$0xff]  }
   0xe   :  { %v623_v60 = vld [vmem:[%s1056_s2] ss:$0 sm:$0xff] }
   0xf   :  { %338 = vmatpush1.bf16.msra.mxu1 %v765_v11  ;;  %v77_v44 = vpack.c.bf16 %v69_v40, %v69_v40  ;;  %v76_v45 = vpack.c.bf16 %v68_v41, %v68_v41  ;;  %v79_v46 = vpack.c.bf16 %v71_v42, %v71_v42  ;;  %v78_v47 = vpack.c.bf16 %v70_v43, %v70_v43  ;;  %v794_v11 = vld [vmem:[%s1059_s5 + $0x38] sm:$0xff]   ;;  %v650_v19 = vld [vmem:[%s1058_s4] ss:$0 sm:$0xff] }
  0x10   :  { %675 = vmatpush3.bf16.msra.mxu0 %v766_v12  ;;  %339 = vmatprep.subr.bf16.mxu1 %v832_v1  ;;  %v795_v12 = vld [vmem:[%s1059_s5 + $0x30] sm:$0xff]   ;;  %v659_v31 = vld [vmem:[%s1060_s6] ss:$0 sm:$0xff] }
  0x11   :  { %676 = vmatprep.subr.bf16.mxu0 %v767_v13  ;;  %323 = vmatprep.mubr.bf16.mxu0 %v77_v44  ;;  %v796_v13 = vld [vmem:[%s1059_s5 + $0x28] sm:$0xff]  }
  0x12   :  { %649 = vmatprep.mubr.msk.bf16.mxu1 %vm287_vm0, %v79_v46 }
  0x13   :  { %340 = vmatpush1.bf16.msra.mxu1 %v768_v14  ;;  %v797_v14 = vld [vmem:[%s1059_s5 + $0x20] sm:$0xff]  }
  0x14   :  { %677 = vmatpush3.bf16.msra.mxu0 %v769_v15  ;;  %341 = vmatprep.subr.bf16.mxu1 %v832_v1  ;;  %v798_v15 = vld [vmem:[%s1059_s5 + $0x18] sm:$0xff]  }
  0x15   :  { %678 = vmatprep.subr.bf16.mxu0 %v770_v16  ;;  %v799_v16 = vld [vmem:[%s1059_s5 + $0x10] sm:$0xff]  }
  0x17   :  { %342 = vmatpush1.bf16.msra.mxu1 %v771_v17  ;;  %v800_v17 = vld [vmem:[%s1059_s5 + $0x8] sm:$0xff]  }
  0x18   :  { %679 = vmatpush3.bf16.msra.mxu0 %v772_v18  ;;  %343 = vmatprep.subr.bf16.mxu1 %v832_v1  ;;  %v801_v18 = vld [vmem:[%s1059_s5] sm:$0xff]  }
  0x19   :  { %680 = vmatprep.subr.bf16.mxu0 %v773_v20 }
  0x1b   :  { %344 = vmatpush1.bf16.msra.mxu1 %v774_v21 }
  0x1c   :  { %681 = vmatpush3.bf16.msra.mxu0 %v775_v22  ;;  %345 = vmatprep.subr.bf16.mxu1 %v832_v1 }
  0x1d   :  { %682 = vmatprep.subr.bf16.mxu0 %v776_v23 }
  0x1f   :  { %346 = vmatpush1.bf16.msra.mxu1 %v777_v27 }
  0x20   :  { %683 = vmatpush3.bf16.msra.mxu0 %v778_v29  ;;  %361 = vmatprep.subr.bf16.mxu1 %v832_v1 }
  0x21   :  { %708 = vmatprep.subr.bf16.mxu0 %v834_v49 }
  0x23   :  { %362 = vmatpush2.bf16.msra.mxu1 %v783_v35  ;;  %324 = vmatmul.mubr.bf16.vlgmr.msra.gmra.mxu0 %v76_v45 }
  0x24   :  { %728 = vmatprep.subr.bf16.mxu1 %v834_v49  ;;  %709 = vmatpush3.bf16.msra.mxu0 %v786_v48 }
  0x25   :  { %710 = vmatprep.subr.bf16.mxu0 %v834_v49  ;;  %724 = vmatprep.mubr.msk.bf16.mxu0 %vm835_vm1, %v834_v49 }
  0x26   :  { %364 = vmatmul.mubr.bf16.vlgmr.msra.gmra.mxu1 %v78_v47 }
  0x27   :  { %744 = vmatprep.mubr.msk.bf16.mxu1 %vm835_vm1, %v834_v49  ;;  %729 = vmatpush3.bf16.msra.mxu1 %v794_v11 }
  0x28   :  { %711 = vmatpush3.bf16.msra.mxu0 %v787_v50  ;;  %730 = vmatprep.subr.bf16.mxu1 %v834_v49 }
  0x29   :  { %712 = vmatprep.subr.bf16.mxu0 %v834_v49 }
  0x2b   :  { %731 = vmatpush3.bf16.msra.mxu1 %v795_v12 }
  0x2c   :  { %713 = vmatpush3.bf16.msra.mxu0 %v788_v51  ;;  %732 = vmatprep.subr.bf16.mxu1 %v834_v49 }
  0x2d   :  { %714 = vmatprep.subr.bf16.mxu0 %v834_v49 }
  0x2f   :  { %733 = vmatpush3.bf16.msra.mxu1 %v796_v13 }
  0x30   :  { %715 = vmatpush3.bf16.msra.mxu0 %v789_v52  ;;  %734 = vmatprep.subr.bf16.mxu1 %v834_v49 }
  0x31   :  { %716 = vmatprep.subr.bf16.mxu0 %v834_v49 }
  0x33   :  { %735 = vmatpush3.bf16.msra.mxu1 %v797_v14 }
  0x34   :  { %717 = vmatpush3.bf16.msra.mxu0 %v790_v53  ;;  %736 = vmatprep.subr.bf16.mxu1 %v834_v49 }
  0x35   :  { %718 = vmatprep.subr.bf16.mxu0 %v834_v49 }
  0x37   :  { %737 = vmatpush3.bf16.msra.mxu1 %v798_v15 }
  0x38   :  { %719 = vmatpush3.bf16.msra.mxu0 %v791_v54  ;;  %738 = vmatprep.subr.bf16.mxu1 %v834_v49 }
  0x39   :  { %720 = vmatprep.subr.bf16.mxu0 %v834_v49 }
  0x3b   :  { %739 = vmatpush3.bf16.msra.mxu1 %v799_v16 }
  0x3c   :  { %721 = vmatpush3.bf16.msra.mxu0 %v792_v55  ;;  %740 = vmatprep.subr.bf16.mxu1 %v834_v49 }
  0x3d   :  { %722 = vmatprep.subr.bf16.mxu0 %v834_v49 }
  0x3f   :  { %741 = vmatpush3.bf16.msra.mxu1 %v800_v17 }
  0x40   :  { %723 = vmatpush3.bf16.msra.mxu0 %v793_v56  ;;  %742 = vmatprep.subr.bf16.mxu1 %v834_v49 }
  0x43   :  { %743 = vmatpush3.bf16.msra.mxu1 %v801_v18 }
  0xe3   :  { %v684_v57 = vpop.f32.mrf.mxu0 }
  0xe5   :  { %v685_v59 = vpop.f32.mrf.mxu0 }
  0xe6   :  { %v365_v58 = vpop.f32.mrf.mxu1  ;;  %v686_v61 = vadd.f32 %v685_v59, %v684_v57 }
  0xe7   :  { %v687_v63 = vpop.f32.mrf.mxu0 }
  0xe8   :  { %v367_v62 = vpop.f32.mrf.mxu1  ;;  %v326_v0 = vadd.f32 %v686_v61, %v623_v60 }
  0xe9   :  { %v688_v2 = vpop.f32.mrf.mxu0 }
  0xea   :  { %v368_v1 = vpop.f32.mrf.mxu1  ;;  %v366_v3 = vadd.f32 %v365_v58, %v326_v0 }
  0xec   :  { %v369_v4 = vpop.f32.mrf.mxu1  ;;  %v371_v5 = vsub.f32 0.0, %v366_v3 }
  0xee   :  { %v372_v6 = vmul.f32 1.442695, %v371_v5 }
  0xf0   :  { %802 = vpow2.f32 %v372_v6 }
  0xfd   :  { %v803_v7 = vpop.eup %802 }
  0xfe   :  { %v374_v8 = vadd.f32 1.0, %v803_v7 }
 0x100   :  { %804 = vrcp.f32 %v374_v8 }
 0x10d   :  { %v805_v9 = vpop.eup %804 }
 0x10e   :  { %v376_v10 = vpack.c.bf16 %v805_v9, %v805_v9 }
 0x110   :  { %725 = vmatmul.mubr.bf16.vlgmr.msra.gmra.mxu0 %v376_v10 }
 0x1d0   :  { %v482_v20 = vpop.f32.mrf.mxu0 }
 0x1d1   :  { %v483_v21 = vadd.f32 %v650_v19, %v482_v20 }
 0x1d2   :  { %v726_v22 = vpop.f32.mrf.mxu0 }
 0x1d3   :  { %v488_v23 = vsub.f32 0.0, %v483_v21 }
 0x1d4   :  { %v485_v24 = vpop.f32.mrf.mxu0 }
 0x1d5   :  { %v489_v25 = vmul.f32 1.442695, %v488_v23 }
 0x1d6   :  { %v727_v26 = vpop.f32.mrf.mxu0 }
 0x1d7   :  { %806 = vpow2.f32 %v489_v25 }
 0x1e4   :  { %v807_v27 = vpop.eup %806 }
 0x1e5   :  { %v491_v28 = vadd.f32 1.0, %v807_v27 }
 0x1e7   :  { %808 = vrcp.f32 %v491_v28 }
 0x1f4   :  { %v809_v29 = vpop.eup %808 }
 0x1f5   :  { %v493_v30 = vpack.c.bf16 %v809_v29, %v809_v29 }
 0x1f7   :  { %745 = vmatmul.mubr.bf16.vlgmr.msra.gmra.mxu1 %v493_v30 }
 0x2b7   :  { %v599_v32 = vpop.f32.mrf.mxu1 }
 0x2b8   :  { %v600_v33 = vadd.f32 %v659_v31, %v599_v32 }
 0x2b9   :  { %v746_v34 = vpop.f32.mrf.mxu1 }
 0x2ba   :  { %606 = vst.msk [vmem:[#allocation2] sm:$0xff] %vm605_vm2, %v600_v33 }
 0x2bb   :  { %v602_v35 = vpop.f32.mrf.mxu1 }
 0x2bd   :  { %v747_v36 = vpop.f32.mrf.mxu1 }
 0x2be   :  { %611 = vsyncadd [#allocation3], 96  ;;  %s836_s4 = smov [#allocation2]  }
 0x2bf   :  { %s612_s21 = sshll.u32 %s836_s4, 4  ;;  %s613_s21 = int_to_ptr.vmem [resolvable:$true] %s612_s21 }
 0x2c0   :  { %s810_s22 = scalar_lea.vmem %s613_s21, 32  ;;  %s814_s23 = scalar_lea.vmem %s613_s21, 128 }
 0x2c1   :  { %p811_p0 = scmp.ne.s32.totalorder %s613_s21, %s810_s22  ;;  %p815_p1 = scmp.lt.s32.totalorder %s613_s21, %s613_s21 }
 0x2c2   :  { %p816_p2 = scmp.lt.s32.totalorder %s814_s23, %s810_s22 }
 0x2c4   :  { %p817_p3 = por %p816_p2, %p815_p1 }
 0x2c6   :  { %p818_p4 = pnand %p817_p3, %p811_p0 }
 0x2c8   :  { %821 = shalt.err (!%p818_p4)
}
 0x2c9   :  { %s837_s6 = smov 32   ;;  %s838_s24 = smov 2  }
 0x2ca   :  { %618 = dma.vmem_to_hbm [thread:$0]  %s613_s21, 32, %s1061_s7, [#allocation3], %s837_s6, %s837_s6, %s838_s24  }
 0x2cb   :  { %830 = dma.done.wait [#allocation3], 128  }
 0x2cc   :  { %831 = vsyncadd [#allocation3], 4294967168 }
 0x2cd   :  { %622 = vsyncpa [#allocation3], 1 }

</bundles_post_ra>
